<compile_context>
chip_gen: v7x
topology: tpu7x:2x2x1
jax: 0.10.0
libtpu: 0.0.40
codegen_flags: <defaults>
</compile_context>

<pallas_src>
import functools

import numpy as np
import jax
import jax.numpy as jnp
from jax.experimental import pallas as pl
from jax.experimental.pallas import tpu as pltpu

EPS = 1e-5          # GroupNorm eps (PyTorch default)
NEG_SLOPE = 0.01    # LeakyReLU negative_slope (PyTorch default)


@functools.lru_cache(maxsize=None)
def _roll_sign() -> int:
    """Anchor pltpu.roll's rotation direction against np.roll with one tiny probe."""
    def probe(x_ref, o_ref):
        o_ref[...] = pltpu.roll(x_ref[...], shift=1, axis=1)

    x = jnp.tile(jnp.arange(128, dtype=jnp.float32), (8, 1))
    y = pl.pallas_call(probe, out_shape=jax.ShapeDtypeStruct((8, 128), jnp.float32))(x)
    # np.roll convention: result[0] == 127
    return 1 if float(np.asarray(y)[0, 0]) == 127.0 else -1


def _convxt_fused_kernel(gmat_ref, gamma_ref, beta_ref, w_ref, tbias_ref, x_ref,
                         out_ref, *, H, W, ks, padding, roll_sign):
    """One batch sample, fully lane-dense on the flattened H*W axis.

    gmat_ref  : VMEM (C, C)        f32   group-averaging matrix
    gamma_ref : VMEM (C, 1)        f32   GroupNorm weight
    beta_ref  : VMEM (C, 1)        f32   GroupNorm bias
    w_ref     : VMEM (ks*ks, Cout, C)    conv weights (data channels), tap-major
    tbias_ref : VMEM (Cout, H*W)   f32   exact contribution of the constant-t channel
    x_ref     : VMEM (1, C, H*W)
    out_ref   : VMEM (1, Cout, H*W)
    """
    C = x_ref.shape[1]
    HW = H * W
    mxu_dt = w_ref.dtype

    x = x_ref[0].astype(jnp.float32)                                   # (C, HW)

    # ---- GroupNorm, vectorized (group stats via one small matmul) -------------
    mu = jnp.sum(jnp.dot(gmat_ref[...], x, preferred_element_type=jnp.float32),
                 axis=1, keepdims=True)                                # (C, 1) group mean
    d = x - mu
    var = jnp.sum(jnp.dot(gmat_ref[...], d * d, preferred_element_type=jnp.float32),
                  axis=1, keepdims=True)                               # (C, 1) biased var
    y = d * jax.lax.rsqrt(var + EPS) * gamma_ref[...] + beta_ref[...]
    y = jnp.where(y >= 0.0, y, NEG_SLOPE * y)                          # LeakyReLU(0.01)

    # ---- 3x3 conv: 9 shifted-slab MXU matmuls on the lane-flattened layout ----
    lane = jax.lax.broadcasted_iota(jnp.int32, (C, HW), 1)
    col = lane % W
    acc = tbias_ref[...]                       # (Cout, HW) f32, time-channel term
    for di in range(ks):
        for dj in range(ks):
            u = di - padding
            v = dj - padding
            s = u * W + v                      # pixel shift in the flattened layout
            slab = y if s == 0 else pltpu.roll(y, shift=(roll_sign * -s) % HW, axis=1)
            # zero out samples that fall into the conv's zero padding
            cond = None
            if s > 0:
                cond = lane < (HW - s)
            elif s < 0:
                cond = lane >= (-s)
            if v > 0:
                c2 = col < (W - v)
                cond = c2 if cond is None else (cond & c2)
            elif v < 0:
                c2 = col >= (-v)
                cond = c2 if cond is None else (cond & c2)
            if cond is not None:
                slab = jnp.where(cond, slab, 0.0)
            acc = acc + jnp.dot(w_ref[di * ks + dj], slab.astype(mxu_dt),
                                preferred_element_type=jnp.float32)
    out_ref[0] = acc.astype(out_ref.dtype)


def convxt_forward(t, x, gamma, beta, w, *, ks=3, stride=1, padding=1,
                   mxu_dtype=jnp.bfloat16):
    """Pallas TPU implementation of Convxt.forward(t, x). NCHW in, NCHW out."""
    assert ks == 3 and stride == 1 and padding == 1, "implemented for the module defaults"
    N, C, H, W = x.shape
    Cout, Cin = w.shape[0], w.shape[1]
    assert Cin == C + 1, "Conv2d expects in_c + 1 channels (time channel prepended)"
    assert Cout == C, "the module's forward requires in_c == out_c"
    num_groups = Cout // 2
    cg = C // num_groups
    HW = H * W
    f32 = jnp.float32

    # lane-dense views: spatial flattened onto the 128-lane axis
    x2 = x.reshape(N, C, HW).astype(f32)
    gamma2 = gamma.reshape(C, 1).astype(f32)
    beta2 = beta.reshape(C, 1).astype(f32)

    # group-averaging matrix: sum_lanes(gmat @ x) == per-channel group mean
    gid = jnp.arange(C) // cg
    gmat = (gid[:, None] == gid[None, :]).astype(f32) / float(cg * HW)

    # conv weights for the data channels, tap-major: wk[di*ks+dj] == w[:, 1:, di, dj]
    wk = jnp.transpose(w[:, 1:, :, :], (2, 3, 0, 1)).reshape(ks * ks, Cout, C)
    wk = wk.astype(mxu_dtype)

    # constant time channel folded into an exact per-pixel bias
    # (interior: t * sum(w[:, 0]); edges corrected for the conv's zero padding)
    ih = jnp.arange(H)[:, None] + jnp.arange(ks)[None, :] - padding    # (H, ks)
    iw = jnp.arange(W)[:, None] + jnp.arange(ks)[None, :] - padding    # (W, ks)
    vh = ((ih >= 0) & (ih < H)).astype(f32)
    vw = ((iw >= 0) & (iw < W)).astype(f32)
    tbias = jnp.asarray(t, f32) * jnp.einsum("hu,wv,ouv->ohw", vh, vw,
                                             w[:, 0, :, :].astype(f32))
    tbias = tbias.reshape(Cout, HW)

    kernel = functools.partial(_convxt_fused_kernel, H=H, W=W, ks=ks,
                               padding=padding, roll_sign=_roll_sign())
    out = pl.pallas_call(
        kernel,
        out_shape=jax.ShapeDtypeStruct((N, Cout, HW), f32),
        grid=(N,),
        in_specs=[
            pl.BlockSpec((C, C), lambda n: (0, 0)),                 # gmat
            pl.BlockSpec((C, 1), lambda n: (0, 0)),                 # gamma
            pl.BlockSpec((C, 1), lambda n: (0, 0)),                 # beta
            pl.BlockSpec((ks * ks, Cout, C), lambda n: (0, 0, 0)),  # conv weights
            pl.BlockSpec((Cout, HW), lambda n: (0, 0)),             # time-channel bias
            pl.BlockSpec((1, C, HW), lambda n: (n, 0, 0)),          # x, one sample/step
        ],
        out_specs=pl.BlockSpec((1, Cout, HW), lambda n: (n, 0, 0)),
        compiler_params=pltpu.CompilerParams(
            # independent batch axis -> v7x's two TensorCores split it;
            # per-step VMEM use is ~100 KB, far below the default scoped limit,
            # so vmem_limit_bytes is left at its default. For larger H*W / C,
            # tile the flattened spatial axis and budget ~2x(block bytes) here.
            dimension_semantics=("parallel",),
        ),
    )(gmat, gamma2, beta2, wk, tbias, x2)
    return out.reshape(N, Cout, H, W)


def _reference_numpy(t, x, gamma, beta, w, num_groups):
    """float64 numpy reference for Convxt.forward (sanity check only)."""
    x = np.asarray(x, np.float64)
    gamma = np.asarray(gamma, np.float64)
    beta = np.asarray(beta, np.float64)
    w = np.asarray(w, np.float64)
    N, C, H, W = x.shape
    cg = C // num_groups
    xg = x.reshape(N, num_groups, cg, H, W)
    mu = xg.mean(axis=(2, 3, 4), keepdims=True)
    var = ((xg - mu) ** 2).mean(axis=(2, 3, 4), keepdims=True)
    xn = ((xg - mu) / np.sqrt(var + EPS)).reshape(N, C, H, W)
    y = xn * gamma.reshape(1, C, 1, 1) + beta.reshape(1, C, 1, 1)
    y = np.where(y >= 0.0, y, NEG_SLOPE * y)
    tt = np.full((N, 1, H, W), t, np.float64)
    xtt = np.concatenate([tt, y], axis=1)
    xp = np.pad(xtt, ((0, 0), (0, 0), (1, 1), (1, 1)))
    Cout = w.shape[0]
    out = np.zeros((N, Cout, H, W), np.float64)
    for di in range(3):
        for dj in range(3):
            patch = xp[:, :, di:di + H, dj:dj + W]
            out += np.einsum("oc,nchw->nohw", w[:, :, di, dj], patch)
    return out


if __name__ == "__main__":
    key = jax.random.PRNGKey(0)
    kx, kg, kb, kw = jax.random.split(key, 4)

    # in_c == out_c is required by the module's own forward.
    N, C, H, W = 2, 4, 16, 16
    t = 0.5

    x = jax.random.normal(kx, (N, C, H, W), dtype=jnp.float32)
    gamma = 1.0 + 0.1 * jax.random.normal(kg, (C,), dtype=jnp.float32)    # GN weight
    beta = 0.1 * jax.random.normal(kb, (C,), dtype=jnp.float32)           # GN bias
    w = 0.1 * jax.random.normal(kw, (C, C + 1, 3, 3), dtype=jnp.float32)  # conv weight

    ref = _reference_numpy(t, x, gamma, beta, w, num_groups=C // 2)

    # f32 MXU operands (tolerance allows for the MXU's default f32 rounding mode)
    y32 = jax.block_until_ready(convxt_forward(t, x, gamma, beta, w,
                                               mxu_dtype=jnp.float32))
    assert y32.shape == (N, C, H, W)
    assert np.allclose(np.asarray(y32), ref, atol=2e-2, rtol=2e-2), "f32 kernel mismatch"

    # default bf16 MXU operands (f32 accumulation), looser tolerance for bf16 rounding
    ybf = jax.block_until_ready(convxt_forward(t, x, gamma, beta, w,
                                               mxu_dtype=jnp.bfloat16))
    assert ybf.shape == (N, C, H, W)
    assert np.allclose(np.asarray(ybf), ref, atol=5e-2, rtol=5e-2), "bf16 kernel mismatch"

    print("KERNEL_OK")
</pallas_src>

<mosaic_0001>
module attributes {stable_mosaic.version = 11 : i64} {
  func.func @probe(%arg0: memref<8x128xf32, #tpu.memory_space<vmem>>, %arg1: memref<8x128xf32, #tpu.memory_space<vmem>>) attributes {dimension_semantics = [], scalar_prefetch = 0 : i64, scratch_operands = 0 : i64, tpu.core_type = #tpu.core_type<tc>} {
    %c0 = arith.constant 0 : index
    %c0_0 = arith.constant 0 : index
    %0 = vector.load %arg0[%c0, %c0_0] : memref<8x128xf32, #tpu.memory_space<vmem>>, vector<8x128xf32>
    %c1_i32 = arith.constant 1 : i32
    %1 = tpu.dynamic_rotate %0 by %c1_i32 dim 1 : vector<8x128xf32>, i32 -> vector<8x128xf32>
    %c0_1 = arith.constant 0 : index
    %c0_2 = arith.constant 0 : index
    %2 = vector.load %arg1[%c0_1, %c0_2] : memref<8x128xf32, #tpu.memory_space<vmem>>, vector<8x128xf32>
    tpu.vector_store %arg1[%c0_1, %c0_2], %1 {strides = array<i32>} : memref<8x128xf32, #tpu.memory_space<vmem>>, vector<8x128xf32>,
    return
  }
}

</mosaic_0001>

<bundles_post_ra>
// kernel: tpu_custom_call.1
= control target key start
LH: loop header
LB: loop body
LE: loop exit
PB: predicated region body
PF: predicated region fallthrough
CT: control target
= control target key end

     0   :  { %6 = vsyncpa [#allocation3], 0  ;;  %s128_s0 = inlined_call_operand.hbm [shape: f32[8,128], index: 0, kind: input, shape index: {}]   ;;  %s129_s1 = inlined_call_operand.hbm [shape: f32[8,128], index: 1, kind: output, shape index: {}]  }
   0x1   :  { %7 = vsyncpa [#allocation4], 0  ;;  %s91_s6 = smov [#allocation2]   ;;  %s43_s10 = scalar_lea.hbm %s128_s0, 128 }
   0x2   :  { %s14_s7 = sshll.u32 %s91_s6, 4  ;;  %p44_p0 = scmp.ne.s32.totalorder %s128_s0, %s43_s10  ;;  %s15_s7 = int_to_ptr.vmem [resolvable:$true] %s14_s7 }
   0x3   :  { %p47_p1 = scmp.lt.u32.totalorder %s43_s10, %s128_s0 }
   0x5   :  { %p49_p2 = pnand %p47_p1, %p44_p0 }
   0x7   :  { %52 = shalt.err (!%p49_p2)
}
   0x8   :  { %s53_s15 = scalar_lea.vmem %s15_s7, 128  ;;  %p58_p4 = scmp.lt.s32.totalorder %s15_s7, %s15_s7 }
   0x9   :  { %p54_p3 = scmp.ne.s32.totalorder %s15_s7, %s53_s15  ;;  %p59_p5 = scmp.lt.s32.totalorder %s53_s15, %s53_s15 }
   0xb   :  { %p60_p6 = por %p59_p5, %p58_p4 }
   0xd   :  { %p61_p7 = pnand %p60_p6, %p54_p3 }
   0xf   :  { %64 = shalt.err (!%p61_p7)
}
  0x10   :  { %17 = dma.hbm_to_vmem [thread:$0]  %s128_s0, 128, %s15_s7, [#allocation3]  }
  0x11   :  { %87 = dma.done.wait [#allocation3], 128  }
  0x12   :  { %88 = vsyncadd [#allocation3], 4294967168  ;;  %v21_v0 = vld [vmem:[#allocation2] sm:$0xff]  ;;  %s92_s18 = smov 1   ;;  %s93_s19 = smov [#allocation5]  }
  0x13   :  { %22 = vrot.lane.b32.xlu0 %v21_v0, %s92_s18  ;;  %s31_s20 = sshll.u32 %s93_s19, 4  ;;  %s32_s20 = int_to_ptr.vmem [resolvable:$true] %s31_s20 }
  0x14   :  { %s65_s21 = scalar_lea.vmem %s32_s20, 128  ;;  %p70_p9 = scmp.lt.s32.totalorder %s32_s20, %s32_s20 }
  0x15   :  { %p66_p8 = scmp.ne.s32.totalorder %s32_s20, %s65_s21  ;;  %p71_p10 = scmp.lt.s32.totalorder %s65_s21, %s65_s21 }
  0x17   :  { %p72_p11 = por %p71_p10, %p70_p9 }
  0x19   :  { %p73_p12 = pnand %p72_p11, %p66_p8 }
  0x85   :  { %v23_v1 = vpop.permute.xlu0 %22 }
  0x86   :  { %24 = vst [vmem:[#allocation5] sm:$0xff] %v23_v1 }
  0x87   :  { %76 = shalt.err (!%p73_p12)
}
  0x88   :  { %s77_s0 = scalar_lea.hbm %s129_s1, 128 }
  0x89   :  { %p78_p13 = scmp.ne.s32.totalorder %s129_s1, %s77_s0  ;;  %p81_p0 = scmp.lt.u32.totalorder %s77_s0, %s129_s1 }
  0x8b   :  { %p83_p1 = pnand %p81_p0, %p78_p13 }
  0x8d   :  { %86 = shalt.err (!%p83_p1)
}
  0x8e   :  { %34 = dma.vmem_to_hbm [thread:$0]  %s32_s20, 128, %s129_s1, [#allocation4]  }
  0x8f   :  { %89 = dma.done.wait [#allocation4], 128  }
  0x90   :  { %90 = vsyncadd [#allocation4], 4294967168 }
  0x91   :  { %38 = vsyncpa [#allocation3], 1 }
  0x92   :  { %39 = vsyncpa [#allocation4], 1 }

</bundles_post_ra>
